<compile_context>
chip_gen: v5e
topology: v5e:2x2
jax: 0.10.0
libtpu: 0.0.40
codegen_flags: <defaults>
</compile_context>

<pallas_src>
import math
from functools import partial

import jax
import jax.numpy as jnp
from jax.experimental import pallas as pl
from jax.experimental.pallas import tpu as pltpu

_LANES = 128
_SUBLANES = 8


def _default_block_bytes() -> int:
    """Per-buffer block byte budget, tuned per TPU generation."""
    try:
        kind = jax.devices()[0].device_kind.lower().replace(" ", "")
    except Exception:
        return 2 * 1024 * 1024
    if "v5lite" in kind or "v5e" in kind:
        return 2 * 1024 * 1024   # v5e: 16 MiB default scoped VMEM, ~820 GB/s HBM
    if "v6" in kind:
        return 4 * 1024 * 1024   # v6e: ~86% of roofline at 4 MiB, fits 32 MiB scoped VMEM
    if "7" in kind:
        return 6 * 1024 * 1024   # v7x: 3.2 TB/s HBM -> amortize 0.35 us/step, 4x6 MiB < 32 MiB
    return 2 * 1024 * 1024


def _chunked_kernel(inv_keep_prob, keep_ref, x_ref, o_ref):
    """One (sample, chunk) tile.

    keep_ref: SMEM (B,) int32 in {0, 1} (scalar-prefetch arg).
    x_ref/o_ref: VMEM (1, tile_rows, 128) tiles of the flattened input/output.
    """
    b = pl.program_id(0)
    keep = keep_ref[b]

    @pl.when(keep == 0)
    def _():
        # Dropped sample: input fetch was deduped to block 0; just write zeros.
        o_ref[...] = jnp.zeros_like(o_ref)

    @pl.when(keep != 0)
    def _():
        # f32 scalar multiply, then cast to the storage dtype (HBM-bound -> free).
        o_ref[...] = (x_ref[...] * jnp.float32(inv_keep_prob)).astype(o_ref.dtype)


def _batch_kernel(scale_ref, x_ref, o_ref):
    """(TILE_B, rows, 128) tile; scale_ref (TILE_B, 1, 1) f32 broadcasts per sample."""
    o_ref[...] = (x_ref[...] * scale_ref[...]).astype(o_ref.dtype)


@partial(jax.jit, static_argnames=("drop_prob", "block_bytes"))
def _drop_path_impl(x, key, *, drop_prob, block_bytes):
    keep_prob = 1.0 - drop_prob
    orig_shape = x.shape
    B = x.shape[0]
    L = math.prod(x.shape[1:])
    itemsize = jnp.dtype(x.dtype).itemsize

    # Per-sample mask: floor(keep_prob + U[0,1)) in {0.0, 1.0}.
    rand = jax.random.uniform(key, (B,), dtype=jnp.float32)
    mask = jnp.floor(keep_prob + rand)

    # Lane-dense (B, rows, 128) view with minimal (<128 elem/sample) padding.
    rows = pl.cdiv(L, _LANES)
    L128 = rows * _LANES
    x2 = x.reshape(B, L)
    if L128 != L:
        x2 = jnp.pad(x2, ((0, 0), (0, L128 - L)))  # padded lanes sliced off below
    x3 = x2.reshape(B, rows, _LANES)

    per_sample_bytes = rows * _LANES * itemsize

    if 2 * per_sample_bytes >= block_bytes or B == 1:
        # ---- chunked per-sample path with scalar-prefetch DMA skip ----
        target_rows = max(_SUBLANES,
                          (block_bytes // (_LANES * itemsize))
                          // _SUBLANES * _SUBLANES)
        tile_rows = min(rows, target_rows)
        if tile_rows != rows:
            # Block sublane dim must be a multiple of 8 unless it equals the
            # full array dim; ragged last block is masked by Pallas.
            tile_rows = max(_SUBLANES, tile_rows // _SUBLANES * _SUBLANES)
        n_chunks = pl.cdiv(rows, tile_rows)

        keep_i32 = mask.astype(jnp.int32)

        out3 = pl.pallas_call(
            partial(_chunked_kernel, 1.0 / keep_prob),
            out_shape=jax.ShapeDtypeStruct((B, rows, _LANES), x.dtype),
            grid_spec=pltpu.PrefetchScalarGridSpec(
                num_scalar_prefetch=1,
                grid=(B, n_chunks),  # chunk axis innermost -> constant-index steps dedupe
                in_specs=[
                    # Dropped sample (keep==0): block index pinned to (b, 0, 0)
                    # for every chunk -> consecutive fetches dedupe, HBM read skipped.
                    pl.BlockSpec((1, tile_rows, _LANES),
                                 lambda b, c, keep: (b, c * keep[b], 0)),
                ],
                out_specs=pl.BlockSpec((1, tile_rows, _LANES),
                                       lambda b, c, keep: (b, c, 0)),
            ),
            compiler_params=pltpu.CompilerParams(
                dimension_semantics=("parallel", "parallel")),
        )(keep_i32, x3)
    else:
        # ---- batch-tiled path for small per-sample sizes ----
        tile_b = max(1, min(B, block_bytes // per_sample_bytes))
        n_b = pl.cdiv(B, tile_b)
        scale = (mask * (1.0 / keep_prob)).reshape(B, 1, 1)  # f32 per-sample scale

        out3 = pl.pallas_call(
            _batch_kernel,
            out_shape=jax.ShapeDtypeStruct((B, rows, _LANES), x.dtype),
            grid=(n_b,),
            in_specs=[
                pl.BlockSpec((tile_b, 1, 1), lambda i: (i, 0, 0)),
                pl.BlockSpec((tile_b, rows, _LANES), lambda i: (i, 0, 0)),
            ],
            out_specs=pl.BlockSpec((tile_b, rows, _LANES), lambda i: (i, 0, 0)),
            compiler_params=pltpu.CompilerParams(
                dimension_semantics=("parallel",)),
        )(scale, x3)

    out = out3.reshape(B, L128)
    if L128 != L:
        out = out[:, :L]
    return out.reshape(orig_shape)


def drop_path(x, drop_prob: float = 0.0, training: bool = False, *,
              key=None, block_bytes=None):
    """Pallas DropPath. x: (B, ...). Per-sample stochastic depth."""
    if drop_prob == 0.0 or not training:
        return x
    if not (0.0 <= drop_prob < 1.0):
        raise ValueError(f"drop_prob must be in [0, 1), got {drop_prob}")
    if key is None:
        raise ValueError("drop_path with drop_prob > 0 in training mode requires "
                         "an explicit PRNG key (pass key=...).")
    if block_bytes is None:
        block_bytes = _default_block_bytes()
    return _drop_path_impl(x, key, drop_prob=float(drop_prob),
                           block_bytes=int(block_bytes))


class DropPath:
    """Minimal module-style wrapper matching the PyTorch class."""

    def __init__(self, drop_prob=None):
        self.drop_prob = drop_prob
        self.training = True

    def __call__(self, x, key=None):
        p = 0.0 if self.drop_prob is None else float(self.drop_prob)
        return drop_path(x, p, self.training, key=key)


if __name__ == "__main__":
    root = jax.random.PRNGKey(0)
    kx, kmask, kx2, kmask2, kx3, kmask3 = jax.random.split(root, 6)

    # 1) Primary small NCHW activation (exercises the batch-tiled path).
    B, C, H, W = 2, 4, 16, 16
    x = jax.random.normal(kx, (B, C, H, W), dtype=jnp.float32)
    mod = DropPath(drop_prob=0.5)
    mod.training = True
    out = jax.block_until_ready(mod(x, key=kmask))

    keep_prob = 0.5
    mask = jnp.floor(keep_prob + jax.random.uniform(kmask, (B,), dtype=jnp.float32))
    ref = x / keep_prob * mask.reshape(B, 1, 1, 1)
    assert out.shape == x.shape and out.dtype == x.dtype
    assert jnp.allclose(out, ref, rtol=1e-6, atol=1e-6), "mismatch (primary)"

    # 2) Flattened length not a multiple of 128 (exercises the 128-pad + slice).
    x2 = jax.random.normal(kx2, (3, 5, 7, 7), dtype=jnp.float32)
    out2 = jax.block_until_ready(drop_path(x2, 0.3, True, key=kmask2))
    mask2 = jnp.floor(0.7 + jax.random.uniform(kmask2, (3,), dtype=jnp.float32))
    ref2 = x2 / 0.7 * mask2.reshape(3, 1, 1, 1)
    assert out2.shape == x2.shape
    assert jnp.allclose(out2, ref2, rtol=1e-5, atol=1e-5), "mismatch (padded)"

    # 3) Chunked per-sample path with scalar-prefetch DMA skip (forced via a
    #    small block budget so the test tensor stays small: rows=256, 2 chunks).
    x3 = jax.random.normal(kx3, (2, 8, 64, 64), dtype=jnp.float32)
    out3 = jax.block_until_ready(
        drop_path(x3, 0.5, True, key=kmask3, block_bytes=64 * 1024))
    mask3 = jnp.floor(0.5 + jax.random.uniform(kmask3, (2,), dtype=jnp.float32))
    ref3 = x3 / 0.5 * mask3.reshape(2, 1, 1, 1)
    assert jnp.allclose(out3, ref3, rtol=1e-5, atol=1e-5), "mismatch (chunked)"

    # 4) bf16 input: multiply happens in f32 and is cast afterwards.
    xb = x.astype(jnp.bfloat16)
    outb = jax.block_until_ready(drop_path(xb, 0.5, True, key=kmask))
    refb = (xb.astype(jnp.float32) / keep_prob * mask.reshape(B, 1, 1, 1)
            ).astype(jnp.bfloat16)
    assert outb.dtype == jnp.bfloat16
    assert jnp.allclose(outb.astype(jnp.float32), refb.astype(jnp.float32),
                        rtol=2e-2, atol=2e-2), "mismatch (bf16)"

    # 5) Eval / drop_prob=0 fast paths return input unchanged.
    mod.training = False
    assert jnp.array_equal(jax.block_until_ready(mod(x, key=kmask)), x)
    assert jnp.array_equal(drop_path(x, 0.0, True, key=kmask), x)

    print("KERNEL_OK")
</pallas_src>

<mosaic_0001>
module attributes {stable_mosaic.version = 11 : i64} {
  func.func @_batch_kernel(%arg0: i32, %arg1: memref<2x1x1xf32, #tpu.memory_space<vmem>>, %arg2: memref<2x8x128xf32, #tpu.memory_space<vmem>>, %arg3: memref<2x8x128xf32, #tpu.memory_space<vmem>>) attributes {dimension_semantics = [#tpu.dimension_semantics<parallel>], iteration_bounds = array<i64: 1>, scalar_prefetch = 0 : i64, scratch_operands = 0 : i64, tpu.core_type = #tpu.core_type<tc>, window_params = [{transform_indices = @transform_0, window_bounds = array<i64: 2, 1, 1>}, {transform_indices = @transform_1, window_bounds = array<i64: 2, 8, 128>}, {transform_indices = @transform_2, window_bounds = array<i64: 2, 8, 128>}]} {
    %c0 = arith.constant 0 : index
    %c0_0 = arith.constant 0 : index
    %c0_1 = arith.constant 0 : index
    %0 = vector.load %arg2[%c0, %c0_0, %c0_1] : memref<2x8x128xf32, #tpu.memory_space<vmem>>, vector<2x8x128xf32>
    %c0_2 = arith.constant 0 : index
    %c0_3 = arith.constant 0 : index
    %c0_4 = arith.constant 0 : index
    %1 = vector.load %arg1[%c0_2, %c0_3, %c0_4] : memref<2x1x1xf32, #tpu.memory_space<vmem>>, vector<2x1x1xf32>
    %2 = vector.broadcast %1 : vector<2x1x1xf32> to vector<2x8x128xf32>
    %3 = arith.mulf %0, %2 : vector<2x8x128xf32>
    %c0_5 = arith.constant 0 : index
    %c0_6 = arith.constant 0 : index
    %c0_7 = arith.constant 0 : index
    %4 = vector.load %arg3[%c0_5, %c0_6, %c0_7] : memref<2x8x128xf32, #tpu.memory_space<vmem>>, vector<2x8x128xf32>
    tpu.vector_store %arg3[%c0_5, %c0_6, %c0_7], %3 {strides = array<i32>} : memref<2x8x128xf32, #tpu.memory_space<vmem>>, vector<2x8x128xf32>,
    return
  }
  func.func @transform_0(%arg0: i32) -> (i32, i32, i32) {
    %c0_i32 = arith.constant 0 : i32
    %c0_i32_0 = arith.constant 0 : i32
    %c0_i32_1 = arith.constant 0 : i32
    return %arg0, %c0_i32, %c0_i32_0 : i32, i32, i32
  }
  func.func @transform_1(%arg0: i32) -> (i32, i32, i32) {
    %c0_i32 = arith.constant 0 : i32
    %c0_i32_0 = arith.constant 0 : i32
    %c0_i32_1 = arith.constant 0 : i32
    return %arg0, %c0_i32, %c0_i32_0 : i32, i32, i32
  }
  func.func @transform_2(%arg0: i32) -> (i32, i32, i32) {
    %c0_i32 = arith.constant 0 : i32
    %c0_i32_0 = arith.constant 0 : i32
    %c0_i32_1 = arith.constant 0 : i32
    return %arg0, %c0_i32, %c0_i32_0 : i32, i32, i32
  }
}

</mosaic_0001>

<bundles_post_ra>
// kernel: _drop_path_impl.1
= control target key start
LH: loop header
LB: loop body
LE: loop exit
PB: predicated region body
PF: predicated region fallthrough
CT: control target
= control target key end

     0   :  { %v39_v0 = vmov 0   ;;  %s73_s0 = inlined_call_operand.vmem [shape: f32[2,1,1], index: 0, kind: input, shape index: {}]   ;;  %s74_s1 = inlined_call_operand.vmem [shape: f32[2,8,128], index: 1, kind: input, shape index: {}]   ;;  %s75_s2 = inlined_call_operand.vmem [shape: f32[2,8,128], index: 2, kind: output, shape index: {}]  }
   0x1   :  { %36 = vset.pattern.permute.xlu0 %v39_v0  ;;  %v37_v1 = vld [vmem:[%s73_s0] ss:$0 sm:$0xff]  ;;  %v38_v2 = vld [vmem:[%s73_s0 + $0x1] ss:$0 sm:$0xff]  ;;  %v12_v6 = vld [vmem:[%s74_s1 + $0x8] sm:$0xff] }
   0x2   :  { %20 = vperm.xlu0 %36, %v37_v1   ;;  %v11_v3 = vld [vmem:[%s74_s1] sm:$0xff] }
   0xa   :  { %24 = vperm.xlu0 %36, %v38_v2  }
  0x74   :  { %v21_v4 = vpop.permute.xlu0 %20 }
  0x75   :  { %v27_v5 = vmul.f32 %v21_v4, %v11_v3 }
  0x77   :  { %29 = vst [vmem:[%s75_s2] sm:$0xff] %v27_v5 }
  0x7c   :  { %v25_v7 = vpop.permute.xlu0 %24 }
  0x7d   :  { %v28_v8 = vmul.f32 %v25_v7, %v12_v6 }
  0x7f   :  { %30 = vst [vmem:[%s75_s2 + $0x8] sm:$0xff] %v28_v8 }

</bundles_post_ra>
